<compile_context>
chip_gen: v6e
topology: v6e:2x2x1
jax: 0.10.0
libtpu: 0.0.40
codegen_flags: <defaults>
</compile_context>

<pallas_src>
import functools

import jax
import jax.numpy as jnp
from jax import lax
from jax.experimental import pallas as pl
from jax.experimental.pallas import tpu as pltpu

LN_EPS = 1e-5


def _round_up(x, m):
    return (x + m - 1) // m * m


def _layernorm(x, gamma, beta):
    # LayerNorm over last dim (torch.nn.LayerNorm semantics, biased variance).
    # rsqrt -> EUP slot; cross-lane mean -> XLU slot.
    mu = jnp.mean(x, axis=-1, keepdims=True)
    xc = x - mu
    var = jnp.mean(xc * xc, axis=-1, keepdims=True)
    inv = lax.rsqrt(var + LN_EPS)
    return xc * inv * gamma + beta


def actor_kernel(state_ref, w1_ref, w23_ref, wh_ref, vec_ref, out_ref,
                 *, hidden, out_dim):
    x = state_ref[...]

    # Unpack the packed bias/gamma/beta slab once (each row used exactly once,
    # so the non-CSE'd broadcast_in_dim cost is paid once per row per step).
    vec = vec_ref[...]                                  # [8, vec_w]
    b1, g1, be1 = vec[0:1, :hidden], vec[1:2, :hidden], vec[2:3, :hidden]
    b2, g2, be2 = vec[3:4, :hidden], vec[4:5, :hidden], vec[5:6, :hidden]
    b3 = vec[6:7, :hidden]
    bh = vec[7:8, :2 * out_dim]

    w1 = w1_ref[...]                                    # [in_dim, hidden]
    w2 = w23_ref[:, 0:hidden]                           # [hidden, hidden]
    w3 = w23_ref[:, hidden:2 * hidden]                  # [hidden, hidden]
    wh = wh_ref[...]                                    # [hidden, 2*out_dim]

    # fc1 -> LayerNorm1 -> ReLU
    h = jnp.dot(x, w1, preferred_element_type=jnp.float32) + b1
    h = jnp.maximum(_layernorm(h, g1, be1), 0.0)

    # fc2 -> LayerNorm2 -> ReLU
    h = jnp.dot(h, w2, preferred_element_type=jnp.float32) + b2
    h = jnp.maximum(_layernorm(h, g2, be2), 0.0)

    # fc3 -> ReLU -> Dropout (eval mode: identity)
    h = jnp.dot(h, w3, preferred_element_type=jnp.float32) + b3
    h = jnp.maximum(h, 0.0)

    # Fused heads: one narrow matmul -> [TB, 2*out_dim].
    # Columns [0, out_dim)       -> mean head (tanh)
    # Columns [out_dim, 2*out_dim) -> std head (clamp + exp)
    z = jnp.dot(h, wh, preferred_element_type=jnp.float32) + bh
    col = lax.broadcasted_iota(jnp.int32, z.shape, 1)
    out_ref[...] = jnp.where(col < out_dim,
                             jnp.tanh(z),
                             jnp.exp(jnp.clip(z, -20.0, 20.0)))


def pack_params(params):
    """Pack PyTorch-style params into the 4 slabs the kernel consumes."""
    hidden = params["w2"].shape[0]
    out_dim = params["wm"].shape[1]
    head_w = 2 * out_dim
    vec_w = max(hidden, head_w)

    w23 = jnp.concatenate([params["w2"], params["w3"]], axis=1)   # [h, 2h]
    wh = jnp.concatenate([params["wm"], params["ws"]], axis=1)    # [h, 2*out]
    bh = jnp.concatenate([params["bm"], params["bs"]], axis=1)    # [1, 2*out]

    def pad_row(v):
        row = jnp.zeros((1, vec_w), jnp.float32)
        return row.at[:, :v.shape[1]].set(v)

    vec = jnp.concatenate([
        pad_row(params["b1"]), pad_row(params["g1"]), pad_row(params["be1"]),
        pad_row(params["b2"]), pad_row(params["g2"]), pad_row(params["be2"]),
        pad_row(params["b3"]), pad_row(bh)], axis=0)              # [8, vec_w]

    return {"w1": params["w1"], "w23": w23, "wh": wh, "vec": vec,
            "hidden": hidden, "out_dim": out_dim}


def actor_forward(state, packed, tile_b=2048):
    """state: [B, input_dim] f32.  Returns (mean [B, out], std [B, out])."""
    B, in_dim = state.shape
    hidden = packed["hidden"]
    out_dim = packed["out_dim"]
    head_w = 2 * out_dim

    # Batch tiling.  Per-row double-buffered VMEM cost is ~1.5 KiB, so a big
    # tile (default 2048) is comfortably within every generation's scoped VMEM
    # and amortizes the ~0.35 us per-grid-step overhead.  When the batch is
    # large enough, pick the tile so the grid has >= 2 steps so the "parallel"
    # batch axis actually shards across v7x's two TensorCores.
    B8 = _round_up(B, 8)
    if B8 > 512:
        TB = min(tile_b, _round_up((B8 + 1) // 2, 8))
    else:
        TB = min(tile_b, B8)
    B_pad = _round_up(B8, TB)
    if B_pad != B:
        state = jnp.pad(state, ((0, B_pad - B), (0, 0)))

    kernel = functools.partial(actor_kernel, hidden=hidden, out_dim=out_dim)
    w1, w23, wh, vec = packed["w1"], packed["w23"], packed["wh"], packed["vec"]

    weight_bytes = 4 * (w1.size + w23.size + wh.size + vec.size)
    cost = pl.CostEstimate(
        flops=int(2 * B_pad * (in_dim * hidden
                               + 2 * hidden * hidden
                               + hidden * head_w)),
        transcendentals=int(B_pad * (2 + head_w)),      # 2 rsqrt + tanh/exp
        bytes_accessed=int(B_pad * 4 * (in_dim + head_w) + weight_bytes),
    )

    out = pl.pallas_call(
        kernel,
        out_shape=jax.ShapeDtypeStruct((B_pad, head_w), jnp.float32),
        grid=(B_pad // TB,),
        in_specs=[
            pl.BlockSpec((TB, in_dim), lambda i: (i, 0)),    # state tile
            pl.BlockSpec(w1.shape, lambda i: (0, 0)),        # VMEM-resident
            pl.BlockSpec(w23.shape, lambda i: (0, 0)),        #   weight slabs
            pl.BlockSpec(wh.shape, lambda i: (0, 0)),         #   (constant
            pl.BlockSpec(vec.shape, lambda i: (0, 0)),        #    index maps)
        ],
        # Narrow output: last dim == full array dim, so the (8,128) rule is
        # satisfied; masked vst but 16x less HBM writeback than a padded slab.
        out_specs=pl.BlockSpec((TB, head_w), lambda i: (i, 0)),
        compiler_params=pltpu.CompilerParams(
            dimension_semantics=("parallel",)),               # v7x: 2 TCs
        cost_estimate=cost,
    )(state, w1, w23, wh, vec)

    mean = out[:B, :out_dim]
    std = out[:B, out_dim:head_w]
    return mean, std


def init_params(key, input_dim, output_dim, hidden_dim=64):
    """PyTorch-style init U(-1/sqrt(fan_in), 1/sqrt(fan_in)); weights [in, out]."""
    def linear(k, fan_in, fan_out):
        kw, kb = jax.random.split(k)
        bound = 1.0 / jnp.sqrt(fan_in)
        w = jax.random.uniform(kw, (fan_in, fan_out), jnp.float32, -bound, bound)
        b = jax.random.uniform(kb, (1, fan_out), jnp.float32, -bound, bound)
        return w, b

    keys = jax.random.split(key, 5)
    w1, b1 = linear(keys[0], input_dim, hidden_dim)
    w2, b2 = linear(keys[1], hidden_dim, hidden_dim)
    w3, b3 = linear(keys[2], hidden_dim, hidden_dim)
    wm, bm = linear(keys[3], hidden_dim, output_dim)
    ws, bs = linear(keys[4], hidden_dim, output_dim)

    return {
        "w1": w1, "b1": b1,
        "g1": jnp.ones((1, hidden_dim), jnp.float32),
        "be1": jnp.zeros((1, hidden_dim), jnp.float32),
        "w2": w2, "b2": b2,
        "g2": jnp.ones((1, hidden_dim), jnp.float32),
        "be2": jnp.zeros((1, hidden_dim), jnp.float32),
        "w3": w3, "b3": b3,
        "wm": wm, "bm": bm,
        "ws": ws, "bs": bs,
    }


def _reference_forward(state, p):
    """Pure-JAX reference for sanity checking."""
    def ln(x, g, b):
        mu = jnp.mean(x, -1, keepdims=True)
        var = jnp.mean((x - mu) ** 2, -1, keepdims=True)
        return (x - mu) / jnp.sqrt(var + LN_EPS) * g + b

    h = jax.nn.relu(ln(state @ p["w1"] + p["b1"], p["g1"], p["be1"]))
    h = jax.nn.relu(ln(h @ p["w2"] + p["b2"], p["g2"], p["be2"]))
    h = jax.nn.relu(h @ p["w3"] + p["b3"])
    mean = jnp.tanh(h @ p["wm"] + p["bm"])
    std = jnp.exp(jnp.clip(h @ p["ws"] + p["bs"], -20.0, 20.0))
    return mean, std


if __name__ == "__main__":
    key = jax.random.PRNGKey(0)
    k_state, k_params = jax.random.split(key)

    batch, input_dim, output_dim, hidden_dim = 8, 16, 4, 64
    state = jax.random.normal(k_state, (batch, input_dim), jnp.float32)
    params = init_params(k_params, input_dim, output_dim, hidden_dim)
    packed = pack_params(params)

    mean, std = actor_forward(state, packed)
    jax.block_until_ready((mean, std))

    mean_ref, std_ref = _reference_forward(state, params)
    assert mean.shape == (batch, output_dim) and std.shape == (batch, output_dim)
    assert jnp.allclose(mean, mean_ref, atol=1e-5, rtol=1e-5)
    assert jnp.allclose(std, std_ref, atol=1e-5, rtol=1e-5)

    print("KERNEL_OK")
</pallas_src>

<mosaic_0001>
module attributes {stable_mosaic.version = 11 : i64} {
  func.func @actor_kernel(%arg0: i32, %arg1: memref<8x16xf32, #tpu.memory_space<vmem>>, %arg2: memref<16x64xf32, #tpu.memory_space<vmem>>, %arg3: memref<64x128xf32, #tpu.memory_space<vmem>>, %arg4: memref<64x8xf32, #tpu.memory_space<vmem>>, %arg5: memref<8x64xf32, #tpu.memory_space<vmem>>, %arg6: memref<8x8xf32, #tpu.memory_space<vmem>>) attributes {dimension_semantics = [#tpu.dimension_semantics<parallel>], iteration_bounds = array<i64: 1>, scalar_prefetch = 0 : i64, scratch_operands = 0 : i64, tpu.core_type = #tpu.core_type<tc>, window_params = [{transform_indices = @transform_0, window_bounds = array<i64: 8, 16>}, {pipeline_mode = #tpu.pipeline_mode<synchronous>, transform_indices = @transform_1, window_bounds = array<i64: 16, 64>}, {pipeline_mode = #tpu.pipeline_mode<synchronous>, transform_indices = @transform_2, window_bounds = array<i64: 64, 128>}, {pipeline_mode = #tpu.pipeline_mode<synchronous>, transform_indices = @transform_3, window_bounds = array<i64: 64, 8>}, {pipeline_mode = #tpu.pipeline_mode<synchronous>, transform_indices = @transform_4, window_bounds = array<i64: 8, 64>}, {transform_indices = @transform_5, window_bounds = array<i64: 8, 8>}]} {
    %c0 = arith.constant 0 : index
    %c0_0 = arith.constant 0 : index
    %0 = vector.load %arg1[%c0, %c0_0] : memref<8x16xf32, #tpu.memory_space<vmem>>, vector<8x16xf32>
    %c0_1 = arith.constant 0 : index
    %c0_2 = arith.constant 0 : index
    %1 = vector.load %arg5[%c0_1, %c0_2] : memref<8x64xf32, #tpu.memory_space<vmem>>, vector<8x64xf32>
    %2 = vector.extract_strided_slice %1 {offsets = [0, 0], sizes = [1, 64], strides = [1, 1]} : vector<8x64xf32> to vector<1x64xf32>
    %3 = vector.extract_strided_slice %1 {offsets = [1, 0], sizes = [1, 64], strides = [1, 1]} : vector<8x64xf32> to vector<1x64xf32>
    %4 = vector.extract_strided_slice %1 {offsets = [2, 0], sizes = [1, 64], strides = [1, 1]} : vector<8x64xf32> to vector<1x64xf32>
    %5 = vector.extract_strided_slice %1 {offsets = [3, 0], sizes = [1, 64], strides = [1, 1]} : vector<8x64xf32> to vector<1x64xf32>
    %6 = vector.extract_strided_slice %1 {offsets = [4, 0], sizes = [1, 64], strides = [1, 1]} : vector<8x64xf32> to vector<1x64xf32>
    %7 = vector.extract_strided_slice %1 {offsets = [5, 0], sizes = [1, 64], strides = [1, 1]} : vector<8x64xf32> to vector<1x64xf32>
    %8 = vector.extract_strided_slice %1 {offsets = [6, 0], sizes = [1, 64], strides = [1, 1]} : vector<8x64xf32> to vector<1x64xf32>
    %9 = vector.extract_strided_slice %1 {offsets = [7, 0], sizes = [1, 8], strides = [1, 1]} : vector<8x64xf32> to vector<1x8xf32>
    %c0_3 = arith.constant 0 : index
    %c0_4 = arith.constant 0 : index
    %10 = vector.load %arg2[%c0_3, %c0_4] : memref<16x64xf32, #tpu.memory_space<vmem>>, vector<16x64xf32>
    %c0_5 = arith.constant 0 : index
    %c0_6 = arith.constant 0 : index
    %11 = vector.load %arg3[%c0_5, %c0_6] : memref<64x128xf32, #tpu.memory_space<vmem>>, vector<64x64xf32>
    %c0_7 = arith.constant 0 : index
    %c64 = arith.constant 64 : index
    %12 = vector.load %arg3[%c0_7, %c64] : memref<64x128xf32, #tpu.memory_space<vmem>>, vector<64x64xf32>
    %c0_8 = arith.constant 0 : index
    %c0_9 = arith.constant 0 : index
    %13 = vector.load %arg4[%c0_8, %c0_9] : memref<64x8xf32, #tpu.memory_space<vmem>>, vector<64x8xf32>
    %cst = arith.constant dense<0.000000e+00> : vector<8x64xf32>
    %14 = tpu.matmul %0, %10, %cst {dimension_numbers = #tpu.dot_dimension_numbers<[1], [0], [0], [1], [0, 0, 1, 1], [], []>} : vector<8x16xf32>, vector<16x64xf32>, vector<8x64xf32> -> vector<8x64xf32>
    %15 = vector.broadcast %2 : vector<1x64xf32> to vector<8x64xf32>
    %16 = arith.addf %14, %15 : vector<8x64xf32>
    %cst_10 = arith.constant dense<0.000000e+00> : vector<8xf32>
    %17 = vector.multi_reduction <add>, %16, %cst_10 [1] : vector<8x64xf32> to vector<8xf32>
    %18 = vector.shape_cast %17 : vector<8xf32> to vector<8x1xf32>
    %cst_11 = arith.constant 6.400000e+01 : f32
    %19 = vector.broadcast %cst_11 : f32 to vector<8x1xf32>
    %20 = arith.divf %18, %19 : vector<8x1xf32>
    %21 = vector.broadcast %20 : vector<8x1xf32> to vector<8x64xf32>
    %22 = arith.subf %16, %21 : vector<8x64xf32>
    %23 = arith.mulf %22, %22 : vector<8x64xf32>
    %cst_12 = arith.constant dense<0.000000e+00> : vector<8xf32>
    %24 = vector.multi_reduction <add>, %23, %cst_12 [1] : vector<8x64xf32> to vector<8xf32>
    %25 = vector.shape_cast %24 : vector<8xf32> to vector<8x1xf32>
    %cst_13 = arith.constant 6.400000e+01 : f32
    %26 = vector.broadcast %cst_13 : f32 to vector<8x1xf32>
    %27 = arith.divf %25, %26 : vector<8x1xf32>
    %cst_14 = arith.constant 9.99999974E-6 : f32
    %28 = vector.broadcast %cst_14 : f32 to vector<8x1xf32>
    %29 = arith.addf %27, %28 : vector<8x1xf32>
    %30 = math.rsqrt %29 : vector<8x1xf32>
    %31 = vector.broadcast %30 : vector<8x1xf32> to vector<8x64xf32>
    %32 = arith.mulf %22, %31 : vector<8x64xf32>
    %33 = vector.broadcast %3 : vector<1x64xf32> to vector<8x64xf32>
    %34 = arith.mulf %32, %33 : vector<8x64xf32>
    %35 = vector.broadcast %4 : vector<1x64xf32> to vector<8x64xf32>
    %36 = arith.addf %34, %35 : vector<8x64xf32>
    %cst_15 = arith.constant 0.000000e+00 : f32
    %37 = vector.broadcast %cst_15 : f32 to vector<8x64xf32>
    %38 = arith.maximumf %36, %37 : vector<8x64xf32>
    %cst_16 = arith.constant dense<0.000000e+00> : vector<8x64xf32>
    %39 = tpu.matmul %38, %11, %cst_16 {dimension_numbers = #tpu.dot_dimension_numbers<[1], [0], [0], [1], [0, 0, 1, 1], [], []>} : vector<8x64xf32>, vector<64x64xf32>, vector<8x64xf32> -> vector<8x64xf32>
    %40 = vector.broadcast %5 : vector<1x64xf32> to vector<8x64xf32>
    %41 = arith.addf %39, %40 : vector<8x64xf32>
    %cst_17 = arith.constant dense<0.000000e+00> : vector<8xf32>
    %42 = vector.multi_reduction <add>, %41, %cst_17 [1] : vector<8x64xf32> to vector<8xf32>
    %43 = vector.shape_cast %42 : vector<8xf32> to vector<8x1xf32>
    %cst_18 = arith.constant 6.400000e+01 : f32
    %44 = vector.broadcast %cst_18 : f32 to vector<8x1xf32>
    %45 = arith.divf %43, %44 : vector<8x1xf32>
    %46 = vector.broadcast %45 : vector<8x1xf32> to vector<8x64xf32>
    %47 = arith.subf %41, %46 : vector<8x64xf32>
    %48 = arith.mulf %47, %47 : vector<8x64xf32>
    %cst_19 = arith.constant dense<0.000000e+00> : vector<8xf32>
    %49 = vector.multi_reduction <add>, %48, %cst_19 [1] : vector<8x64xf32> to vector<8xf32>
    %50 = vector.shape_cast %49 : vector<8xf32> to vector<8x1xf32>
    %cst_20 = arith.constant 6.400000e+01 : f32
    %51 = vector.broadcast %cst_20 : f32 to vector<8x1xf32>
    %52 = arith.divf %50, %51 : vector<8x1xf32>
    %cst_21 = arith.constant 9.99999974E-6 : f32
    %53 = vector.broadcast %cst_21 : f32 to vector<8x1xf32>
    %54 = arith.addf %52, %53 : vector<8x1xf32>
    %55 = math.rsqrt %54 : vector<8x1xf32>
    %56 = vector.broadcast %55 : vector<8x1xf32> to vector<8x64xf32>
    %57 = arith.mulf %47, %56 : vector<8x64xf32>
    %58 = vector.broadcast %6 : vector<1x64xf32> to vector<8x64xf32>
    %59 = arith.mulf %57, %58 : vector<8x64xf32>
    %60 = vector.broadcast %7 : vector<1x64xf32> to vector<8x64xf32>
    %61 = arith.addf %59, %60 : vector<8x64xf32>
    %cst_22 = arith.constant 0.000000e+00 : f32
    %62 = vector.broadcast %cst_22 : f32 to vector<8x64xf32>
    %63 = arith.maximumf %61, %62 : vector<8x64xf32>
    %cst_23 = arith.constant dense<0.000000e+00> : vector<8x64xf32>
    %64 = tpu.matmul %63, %12, %cst_23 {dimension_numbers = #tpu.dot_dimension_numbers<[1], [0], [0], [1], [0, 0, 1, 1], [], []>} : vector<8x64xf32>, vector<64x64xf32>, vector<8x64xf32> -> vector<8x64xf32>
    %65 = vector.broadcast %8 : vector<1x64xf32> to vector<8x64xf32>
    %66 = arith.addf %64, %65 : vector<8x64xf32>
    %cst_24 = arith.constant 0.000000e+00 : f32
    %67 = vector.broadcast %cst_24 : f32 to vector<8x64xf32>
    %68 = arith.maximumf %66, %67 : vector<8x64xf32>
    %cst_25 = arith.constant dense<0.000000e+00> : vector<8x8xf32>
    %69 = tpu.matmul %68, %13, %cst_25 {dimension_numbers = #tpu.dot_dimension_numbers<[1], [0], [0], [1], [0, 0, 1, 1], [], []>} : vector<8x64xf32>, vector<64x8xf32>, vector<8x8xf32> -> vector<8x8xf32>
    %70 = vector.broadcast %9 : vector<1x8xf32> to vector<8x8xf32>
    %71 = arith.addf %69, %70 : vector<8x8xf32>
    %72 = tpu.iota {dimensions = array<i32: 1>} : vector<8x8xi32>
    %c4_i32 = arith.constant 4 : i32
    %73 = vector.broadcast %c4_i32 : i32 to vector<8x8xi32>
    %74 = arith.cmpi slt, %72, %73 : vector<8x8xi32>
    %75 = math.tanh %71 : vector<8x8xf32>
    %cst_26 = arith.constant -2.000000e+01 : f32
    %cst_27 = arith.constant 2.000000e+01 : f32
    %76 = vector.broadcast %cst_26 : f32 to vector<8x8xf32>
    %77 = arith.maximumf %76, %71 : vector<8x8xf32>
    %78 = vector.broadcast %cst_27 : f32 to vector<8x8xf32>
    %79 = arith.minimumf %78, %77 : vector<8x8xf32>
    %80 = math.exp %79 : vector<8x8xf32>
    %81 = arith.select %74, %75, %80 : vector<8x8xi1>, vector<8x8xf32>
    %c0_28 = arith.constant 0 : index
    %c0_29 = arith.constant 0 : index
    %82 = vector.load %arg6[%c0_28, %c0_29] : memref<8x8xf32, #tpu.memory_space<vmem>>, vector<8x8xf32>
    tpu.vector_store %arg6[%c0_28, %c0_29], %81 {strides = array<i32>} : memref<8x8xf32, #tpu.memory_space<vmem>>, vector<8x8xf32>,
    return
  }
  func.func @transform_0(%arg0: i32) -> (i32, i32) {
    %c0_i32 = arith.constant 0 : i32
    %c0_i32_0 = arith.constant 0 : i32
    return %arg0, %c0_i32 : i32, i32
  }
  func.func @transform_1(%arg0: i32) -> (i32, i32) {
    %c0_i32 = arith.constant 0 : i32
    %c0_i32_0 = arith.constant 0 : i32
    %c0_i32_1 = arith.constant 0 : i32
    return %c0_i32, %c0_i32_0 : i32, i32
  }
  func.func @transform_2(%arg0: i32) -> (i32, i32) {
    %c0_i32 = arith.constant 0 : i32
    %c0_i32_0 = arith.constant 0 : i32
    %c0_i32_1 = arith.constant 0 : i32
    return %c0_i32, %c0_i32_0 : i32, i32
  }
  func.func @transform_3(%arg0: i32) -> (i32, i32) {
    %c0_i32 = arith.constant 0 : i32
    %c0_i32_0 = arith.constant 0 : i32
    %c0_i32_1 = arith.constant 0 : i32
    return %c0_i32, %c0_i32_0 : i32, i32
  }
  func.func @transform_4(%arg0: i32) -> (i32, i32) {
    %c0_i32 = arith.constant 0 : i32
    %c0_i32_0 = arith.constant 0 : i32
    %c0_i32_1 = arith.constant 0 : i32
    return %c0_i32, %c0_i32_0 : i32, i32
  }
  func.func @transform_5(%arg0: i32) -> (i32, i32) {
    %c0_i32 = arith.constant 0 : i32
    %c0_i32_0 = arith.constant 0 : i32
    return %arg0, %c0_i32 : i32, i32
  }
}

</mosaic_0001>

<bundles_post_ra>
// kernel: tpu_custom_call.1
= control target key start
LH: loop header
LB: loop body
LE: loop exit
PB: predicated region body
PF: predicated region fallthrough
CT: control target
= control target key end

     0   :  { %10 = vsyncpa [#allocation3], 0  ;;  %s836_s0 = inlined_call_operand.vmem [shape: f32[8,16], index: 0, kind: input, shape index: {}]   ;;  %s837_s1 = inlined_call_operand.hbm [shape: f32[16,64], index: 1, kind: input, shape index: {}]   ;;  %s838_s2 = inlined_call_operand.vmem [shape: f32[64,128], index: 2, kind: input, shape index: {}]   ;;  %s839_s3 = inlined_call_operand.vmem [shape: f32[64,8], index: 3, kind: input, shape index: {}]   ;;  %s840_s4 = inlined_call_operand.hbm [shape: f32[8,64], index: 4, kind: input, shape index: {}]   ;;  %s841_s5 = inlined_call_operand.hbm [shape: f32[8,8], index: 5, kind: output, shape index: {}]  }
   0x1   :  { %11 = vsyncpa [#allocation6], 0 }
   0x2   :  { %12 = vsyncpa [#allocation4], 0  ;;  %s667_s18 = smov [#allocation2]  }
   0x3   :  { %s20_s19 = sshll.u32 %s667_s18, 4  ;;  %s21_s19 = int_to_ptr.vmem [resolvable:$true] %s20_s19 }
   0x4   :  { %s609_s20 = scalar_lea.vmem %s21_s19, 256  ;;  %p614_p1 = scmp.lt.s32.totalorder %s21_s19, %s21_s19 }
   0x5   :  { %p610_p0 = scmp.ne.s32.totalorder %s21_s19, %s609_s20  ;;  %p615_p2 = scmp.lt.s32.totalorder %s609_s20, %s609_s20 }
   0x7   :  { %p616_p3 = por %p615_p2, %p614_p1 }
   0x9   :  { %p617_p4 = pnand %p616_p3, %p610_p0 }
   0xb   :  { %620 = shalt.err (!%p617_p4)
}
   0xc   :  { %s668_s21 = smov 128   ;;  %s669_s22 = smov 8  }
   0xd   :  { %26 = dma.hbm_to_vmem [thread:$0]  %s837_s1, 256, %s21_s19, [#allocation3], %s668_s21, %s668_s21, %s669_s22  }
   0xe   :  { %s670_s25 = smov [#allocation5]  }
   0xf   :  { %s37_s26 = sshll.u32 %s670_s25, 4  ;;  %s38_s26 = int_to_ptr.vmem [resolvable:$true] %s37_s26 }
  0x10   :  { %s629_s27 = scalar_lea.vmem %s38_s26, 128  ;;  %p634_p6 = scmp.lt.s32.totalorder %s38_s26, %s38_s26 }
  0x11   :  { %p630_p5 = scmp.ne.s32.totalorder %s38_s26, %s629_s27  ;;  %p635_p7 = scmp.lt.s32.totalorder %s629_s27, %s629_s27 }
  0x13   :  { %p636_p8 = por %p635_p7, %p634_p6 }
  0x15   :  { %p637_p9 = pnand %p636_p8, %p630_p5 }
  0x17   :  { %640 = shalt.err (!%p637_p9)
}
  0x18   :  { %40 = dma.hbm_to_vmem [thread:$0]  %s840_s4, 128, %s38_s26, [#allocation6]  }
  0x19   :  { %661 = dma.done.wait [#allocation3], 256  }
  0x1a   :  { %662 = vsyncadd [#allocation3], 4294967040 }
  0x1b   :  { %663 = dma.done.wait [#allocation6], 128  }
  0x1c   :  { %664 = vsyncadd [#allocation6], 4294967168  ;;  %v671_v0 = vmov 0.0   ;;  %vm672_vm0 = vmmov 0   ;;  %v50_v1 = vld [vmem:[#allocation2 + $0x8] sm:$0xff]  ;;  %v49_v2 = vld [vmem:[#allocation2] sm:$0xff]  ;;  %v67_v4 = vlaneseq }
  0x1d   :  { %521 = vmatprep.subr.mxu0 %v671_v0  ;;  %525 = vmatprep.mubr.msk.f32.mxu0 %vm672_vm0, %v671_v0  ;;  %v47_v3 = vld [vmem:[%s836_s0] sm:$0xff]  ;;  %vm71_vm1 = vcmask 130048   ;;  %v728_v7 = vld [vmem:[#allocation5] sm:$0xff]  ;;  %vm145_vm2 = vcmask 523264   ;;  %v58_v18 = vld [vmem:[%s838_s2 + $0x38] sm:$0xff]  ;;  %vm468_vm4 = vcmask 64512  }
  0x1e   :  { %528 = vmatprep.subr.mxu1 %v671_v0  ;;  %544 = vmatprep.mubr.msk.f32.mxu1 %vm672_vm0, %v671_v0  ;;  %v725_v5 = vshrl.u32 %v67_v4, 7  ;;  %v57_v19 = vld [vmem:[%s838_s2 + $0x30] sm:$0xff]  ;;  %v56_v20 = vld [vmem:[%s838_s2 + $0x28] sm:$0xff]  ;;  %v55_v21 = vld [vmem:[%s838_s2 + $0x20] sm:$0xff] }
  0x1f   :  { %522 = vmatpush3.msra.mxu0 %v50_v1  ;;  %529 = vmatpush3.msra.mxu1 %v58_v18  ;;  %v54_v22 = vld [vmem:[%s838_s2 + $0x18] sm:$0xff]  ;;  %v53_v23 = vld [vmem:[%s838_s2 + $0x10] sm:$0xff]  ;;  %v52_v24 = vld [vmem:[%s838_s2 + $0x8] sm:$0xff] }
  0x20   :  { %523 = vmatprep.subr.mxu0 %v671_v0  ;;  %v69_v6 = vsub.s32 0, %v725_v5  ;;  %530 = vmatprep.subr.mxu1 %v671_v0  ;;  %v51_v25 = vld [vmem:[%s838_s2] sm:$0xff]  ;;  %v162_v29 = vsub.s32 1, %v725_v5  ;;  %v167_v30 = vsub.s32 2, %v725_v5  ;;  %s673_s2 = smov 64   ;;  %v173_v38 = vsub.s32 3, %v725_v5 }
  0x21   :  { %524 = vmatpush3.msra.mxu0 %v49_v2  ;;  %531 = vmatpush3.msra.mxu1 %v57_v19  ;;  %v66_v54 = vld [vmem:[%s839_s3 + $0x38] sm:$0xff]  ;;  %v65_v55 = vld [vmem:[%s839_s3 + $0x30] sm:$0xff]  ;;  %v64_v56 = vld [vmem:[%s839_s3 + $0x28] sm:$0xff]  ;;  %v263_v2 = vsub.s32 4, %v725_v5 }
  0x22   :  { %526 = vmatmul.mubr.msk.f32.vlgmr.msra.gmra.mxu0 %vm71_vm1, %v47_v3  ;;  %547 = vmatprep.subr.mxu0 %v671_v0  ;;  %v70_v8 = vrot.slane %v728_v7, %v69_v6  ;;  %v163_v31 = vrot.slane %v728_v7, %v162_v29  ;;  %v168_v34 = vrot.slane %v728_v7, %v167_v30  ;;  %v63_v57 = vld [vmem:[%s839_s3 + $0x20] sm:$0xff]  ;;  %v62_v58 = vld [vmem:[%s839_s3 + $0x18] sm:$0xff]  ;;  %v268_v3 = vsub.s32 5, %v725_v5 }
  0x23   :  { %563 = vmatprep.mubr.msk.f32.mxu0 %vm672_vm0, %v671_v0  ;;  %532 = vmatprep.subr.mxu1 %v671_v0  ;;  %v174_v39 = vrot.slane %v728_v7, %v173_v38  ;;  %v264_v6 = vrot.slane %v728_v7, %v263_v2  ;;  %v460_v29 = vand.u32 127, %v67_v4 }
  0x24   :  { %533 = vmatpush3.msra.mxu1 %v56_v20 }
  0x25   :  { %534 = vmatprep.subr.mxu1 %v671_v0  ;;  %vm461_vm3 = vcmp.lt.s32.totalorder %v460_v29, 4 }
  0x26   :  { %535 = vmatpush3.msra.mxu1 %v55_v21 }
  0x27   :  { %536 = vmatprep.subr.mxu1 %v671_v0 }
  0x28   :  { %537 = vmatpush3.msra.mxu1 %v54_v22 }
  0x29   :  { %538 = vmatprep.subr.mxu1 %v671_v0 }
  0x2a   :  { %539 = vmatpush3.msra.mxu1 %v53_v23 }
  0x2b   :  { %540 = vmatprep.subr.mxu1 %v671_v0 }
  0x2c   :  { %541 = vmatpush3.msra.mxu1 %v52_v24 }
  0x2d   :  { %542 = vmatprep.subr.mxu1 %v671_v0 }
  0x2e   :  { %543 = vmatpush3.msra.mxu1 %v51_v25 }
  0x2f   :  { %566 = vmatprep.subr.mxu1 %v671_v0 }
  0xe2   :  { %v141_v9 = vpop.f32.mrf.mxu0 }
  0xe3   :  { %v142_v10 = vadd.f32 %v141_v9, %v70_v8 }
  0xe4   :  { %v527_v11 = vpop.f32.mrf.mxu0 }
  0xe5   :  { %v146_v12 = vsel %vm145_vm2, %v142_v10, 0.0 }
  0xe6   :  { %147 = vadd.xlane.f32.xlu0 %v146_v12 }
 0x16f   :  { %v148_v13 = vpop.xlane.xlu0 %147 }
 0x170   :  { %v150_v14 = vmul.f32 0.015625, %v148_v13 }
 0x172   :  { %v151_v15 = vsub.f32 %v142_v10, %v150_v14  ;;  %v269_v10 = vrot.slane %v728_v7, %v268_v3  ;;  %v61_v14 = vld [vmem:[%s839_s3 + $0x10] sm:$0xff] }
 0x174   :  { %v152_v16 = vmul.f32 %v151_v15, %v151_v15 }
 0x176   :  { %v153_v17 = vsel %vm145_vm2, %v152_v16, 0.0  ;;  %v59_v16 = vld [vmem:[%s839_s3] sm:$0xff] }
 0x177   :  { %154 = vadd.xlane.f32.xlu0 %v153_v17  ;;  %v274_v17 = vsub.s32 6, %v725_v5 }
 0x18d   :  { %298 = vrot.lane.b32.xlu0 %v58_v18, %s673_s2  ;;  %v275_v18 = vrot.slane %v728_v7, %v274_v17 }
 0x191   :  { %290 = vrot.lane.b32.xlu0 %v54_v22, %s673_s2 }
 0x195   :  { %286 = vrot.lane.b32.xlu0 %v52_v24, %s673_s2 }
 0x200   :  { %v155_v26 = vpop.xlane.xlu0 %154 }
 0x201   :  { %v156_v27 = vmul.f32 0.015625, %v155_v26 }
 0x203   :  { %v157_v28 = vadd.f32 1e-05, %v156_v27 }
 0x204   :  { %v299_v44 = vpop.permute.xlu0 %298 }
 0x205   :  { %593 = vrsqrt.f32 %v157_v28  ;;  %548 = vmatpush3.msra.mxu0 %v299_v44 }
 0x206   :  { %549 = vmatprep.subr.mxu0 %v671_v0 }
 0x208   :  { %v291_v53 = vpop.permute.xlu0 %290 }
 0x20c   :  { %v287_v63 = vpop.permute.xlu0 %286 }
 0x212   :  { %v594_v32 = vpop.eup %593 }
 0x213   :  { %v159_v33 = vmul.f32 %v594_v32, %v151_v15  ;;  %v60_v15 = vld [vmem:[%s839_s3 + $0x8] sm:$0xff]  ;;  %s674_s3 = smov [#allocation7]  }
 0x214   :  { %s476_s8 = sshll.u32 %s674_s3, 4  ;;  %s477_s8 = int_to_ptr.vmem [resolvable:$true] %s476_s8 }
 0x215   :  { %v164_v35 = vmul.f32 %v163_v31, %v159_v33  ;;  %s641_s9 = scalar_lea.vmem %s477_s8, 128  ;;  %p646_p11 = scmp.lt.s32.totalorder %s477_s8, %s477_s8 }
 0x216   :  { %p642_p10 = scmp.ne.s32.totalorder %s477_s8, %s641_s9  ;;  %p647_p12 = scmp.lt.s32.totalorder %s641_s9, %s641_s9 }
 0x217   :  { %v169_v36 = vadd.f32 %v168_v34, %v164_v35 }
 0x218   :  { %p648_p13 = por %p647_p12, %p646_p11 }
 0x219   :  { %v170_v37 = vmax.f32 %v169_v36, 0.0 }
 0x21a   :  { %p649_p0 = pnand %p648_p13, %p642_p10 }
 0x21b   :  { %545 = vmatmul.mubr.msk.f32.vlgmr.msra.gmra.mxu1 %vm145_vm2, %v170_v37 }
 0x21c   :  { %582 = vmatprep.mubr.msk.f32.mxu1 %vm672_vm0, %v671_v0  ;;  %567 = vmatpush3.msra.mxu1 %v66_v54 }
 0x21d   :  { %568 = vmatprep.subr.mxu1 %v671_v0 }
 0x21e   :  { %569 = vmatpush3.msra.mxu1 %v65_v55 }
 0x21f   :  { %570 = vmatprep.subr.mxu1 %v671_v0 }
 0x220   :  { %571 = vmatpush3.msra.mxu1 %v64_v56 }
 0x221   :  { %572 = vmatprep.subr.mxu1 %v671_v0 }
 0x222   :  { %573 = vmatpush3.msra.mxu1 %v63_v57 }
 0x223   :  { %574 = vmatprep.subr.mxu1 %v671_v0 }
 0x224   :  { %575 = vmatpush3.msra.mxu1 %v62_v58 }
 0x225   :  { %576 = vmatprep.subr.mxu1 %v671_v0 }
 0x226   :  { %577 = vmatpush3.msra.mxu1 %v61_v14 }
 0x227   :  { %578 = vmatprep.subr.mxu1 %v671_v0 }
 0x228   :  { %579 = vmatpush3.msra.mxu1 %v60_v15 }
 0x229   :  { %580 = vmatprep.subr.mxu1 %v671_v0 }
 0x22a   :  { %581 = vmatpush3.msra.mxu1 %v59_v16 }
 0x2db   :  { %v244_v40 = vpop.f32.mrf.mxu1 }
 0x2dc   :  { %v245_v41 = vadd.f32 %v244_v40, %v174_v39 }
 0x2dd   :  { %v546_v42 = vpop.f32.mrf.mxu1 }
 0x2de   :  { %v248_v43 = vsel %vm145_vm2, %v245_v41, 0.0 }
 0x2df   :  { %249 = vadd.xlane.f32.xlu1 %v248_v43 }
 0x2f0   :  { %296 = vrot.lane.b32.xlu1 %v57_v19, %s673_s2 }
 0x2f4   :  { %294 = vrot.lane.b32.xlu1 %v56_v20, %s673_s2 }
 0x2f8   :  { %292 = vrot.lane.b32.xlu1 %v55_v21, %s673_s2 }
 0x368   :  { %v250_v45 = vpop.xlane.xlu1 %249 }
 0x369   :  { %v251_v46 = vmul.f32 0.015625, %v250_v45 }
 0x36b   :  { %v252_v47 = vsub.f32 %v245_v41, %v251_v46 }
 0x36c   :  { %v297_v48 = vpop.permute.xlu1 %296 }
 0x36d   :  { %v253_v49 = vmul.f32 %v252_v47, %v252_v47  ;;  %550 = vmatpush3.msra.mxu0 %v297_v48 }
 0x36e   :  { %551 = vmatprep.subr.mxu0 %v671_v0 }
 0x36f   :  { %v254_v50 = vsel %vm145_vm2, %v253_v49, 0.0 }
 0x370   :  { %255 = vadd.xlane.f32.xlu1 %v254_v50  ;;  %v295_v51 = vpop.permute.xlu1 %294 }
 0x371   :  { %552 = vmatpush3.msra.mxu0 %v295_v51 }
 0x372   :  { %553 = vmatprep.subr.mxu0 %v671_v0 }
 0x374   :  { %v293_v52 = vpop.permute.xlu1 %292 }
 0x375   :  { %554 = vmatpush3.msra.mxu0 %v293_v52 }
 0x376   :  { %555 = vmatprep.subr.mxu0 %v671_v0 }
 0x377   :  { %556 = vmatpush3.msra.mxu0 %v291_v53 }
 0x378   :  { %557 = vmatprep.subr.mxu0 %v671_v0 }
 0x381   :  { %288 = vrot.lane.b32.xlu1 %v53_v23, %s673_s2  ;;  %v384_v23 = vsub.s32 7, %v725_v5 }
 0x383   :  { %v385_v24 = vrot.slane %v728_v7, %v384_v23 }
 0x385   :  { %284 = vrot.lane.b32.xlu1 %v51_v25, %s673_s2 }
 0x3f9   :  { %v256_v59 = vpop.xlane.xlu1 %255 }
 0x3fa   :  { %v257_v60 = vmul.f32 0.015625, %v256_v59 }
 0x3fc   :  { %v258_v61 = vadd.f32 1e-05, %v257_v60 }
 0x3fd   :  { %v289_v62 = vpop.permute.xlu1 %288 }
 0x3fe   :  { %595 = vrsqrt.f32 %v258_v61  ;;  %558 = vmatpush3.msra.mxu0 %v289_v62 }
 0x3ff   :  { %559 = vmatprep.subr.mxu0 %v671_v0 }
 0x400   :  { %560 = vmatpush3.msra.mxu0 %v287_v63 }
 0x401   :  { %v285_v1 = vpop.permute.xlu1 %284  ;;  %561 = vmatprep.subr.mxu0 %v671_v0 }
 0x402   :  { %562 = vmatpush3.msra.mxu0 %v285_v1 }
 0x40b   :  { %v596_v8 = vpop.eup %595 }
 0x40c   :  { %v260_v9 = vmul.f32 %v596_v8, %v252_v47 }
 0x40e   :  { %v265_v11 = vmul.f32 %v264_v6, %v260_v9 }
 0x410   :  { %v270_v12 = vadd.f32 %v269_v10, %v265_v11 }
 0x412   :  { %v271_v13 = vmax.f32 %v270_v12, 0.0 }
 0x414   :  { %564 = vmatmul.mubr.msk.f32.vlgmr.msra.gmra.mxu0 %vm145_vm2, %v271_v13 }
 0x4d4   :  { %v377_v19 = vpop.f32.mrf.mxu0 }
 0x4d5   :  { %v378_v20 = vadd.f32 %v377_v19, %v275_v18 }
 0x4d6   :  { %v565_v21 = vpop.f32.mrf.mxu0 }
 0x4d7   :  { %v381_v22 = vmax.f32 %v378_v20, 0.0 }
 0x4d9   :  { %583 = vmatmul.mubr.msk.f32.vlgmr.msra.gmra.mxu1 %vm145_vm2, %v381_v22 }
 0x599   :  { %v455_v0 = vpop.f32.mrf.mxu1 }
 0x59a   :  { %v456_v25 = vadd.f32 %v455_v0, %v385_v24 }
 0x59b   :  { %v584_v26 = vpop.f32.mrf.mxu1 }
 0x59c   :  { %v490_v27 = vclamps-f32 %v456_v25, 20.0  ;;  %597 = vtanh.f32 %v456_v25 }
 0x59e   :  { %v465_v28 = vmul.f32 1.442695, %v490_v27 }
 0x5a0   :  { %599 = vpow2.f32 %v465_v28 }
 0x5a9   :  { %v598_v30 = vpop.eup %597 }
 0x5ad   :  { %v600_v31 = vpop.eup %599 }
 0x5ae   :  { %v467_v32 = vsel %vm461_vm3, %v598_v30, %v600_v31 }
 0x5af   :  { %469 = vst.msk [vmem:[#allocation7] sm:$0xff] %vm468_vm4, %v467_v32 }
 0x5b0   :  { %652 = shalt.err (!%p649_p0)
}
 0x5b1   :  { %479 = dma.vmem_to_hbm [thread:$0]  %s477_s8, 128, %s841_s5, [#allocation4]  }
 0x5b2   :  { %665 = dma.done.wait [#allocation4], 128  }
 0x5b3   :  { %666 = vsyncadd [#allocation4], 4294967168 }
 0x5b4   :  { %483 = vsyncpa [#allocation3], 1 }
 0x5b5   :  { %484 = vsyncpa [#allocation6], 1 }
 0x5b6   :  { %485 = vsyncpa [#allocation4], 1 }

</bundles_post_ra>
